<compile_context>
chip_gen: v5e
topology: v5e:2x2
jax: 0.10.0
libtpu: 0.0.40
codegen_flags: <defaults>
</compile_context>

<pallas_src>
import math
from functools import partial

import jax
import jax.numpy as jnp
from jax import lax
from jax.experimental import pallas as pl
from jax.experimental.pallas import tpu as pltpu


# -----------------------------------------------------------------------------
# Fused attention kernel (one batch element, one query tile, one head per step)
# -----------------------------------------------------------------------------
def make_attention_kernel(mm_dtype):
    NT = (((1,), (1,)), ((), ()))   # A @ B^T contraction (q . k over dh)

    def kernel(q_ref, k_ref, v_ref, wqkv_ref, bqkv_ref, wo_ref, bo_ref,
               o_ref, acc_ref):
        h = pl.program_id(2)

        @pl.when(h == 0)
        def _():
            acc_ref[...] = jnp.zeros_like(acc_ref)

        def project(x_ref, j):
            # (N, E) @ (E, dh) on the MXU, f32 accumulation, bias in f32,
            # single cast to the MXU dtype.
            y = jnp.dot(x_ref[0], wqkv_ref[j, 0],
                        preferred_element_type=jnp.float32)
            return (y + bqkv_ref[j, 0]).astype(mm_dtype)

        qh = project(q_ref, 0)             # (tq, dh); 1/sqrt(dh) folded in
        kh = project(k_ref, 1)             # (Nk, dh)
        vh = project(v_ref, 2)             # (Nk, dh)

        # Scores (tq, Nk): bf16 MXU operands, f32 accumulation.
        s = lax.dot_general(qh, kh, NT, preferred_element_type=jnp.float32)

        # Numerically stable softmax in f32; reciprocal on the EUP slot.
        s = s - jnp.max(s, axis=-1, keepdims=True)
        e = jnp.exp(s)
        p = (e * pl.reciprocal(jnp.sum(e, axis=-1, keepdims=True),
                               approx=True)).astype(mm_dtype)

        # (tq, dh) = softmax @ V
        o = jnp.dot(p, vh, preferred_element_type=jnp.float32)

        # Per-head slice of the output projection; head reduction happens as
        # MXU accumulation into the f32 scratch (no (H, Nq, E) intermediate,
        # no VPU add chain).
        acc_ref[...] += jnp.dot(o.astype(mm_dtype), wo_ref[0],
                                preferred_element_type=jnp.float32)

        @pl.when(h == pl.num_programs(2) - 1)
        def _():
            o_ref[0] = (acc_ref[...] + bo_ref[...]).astype(o_ref.dtype)

    return kernel


def _q_tile(nq: int) -> int:
    """Query-axis tile. NOTE: on v7x (64 MiB VMEM) halve the 256 for SAM sizes."""
    if nq <= 256:
        return nq
    for t in (256, 128, 64, 32, 16, 8):
        if nq % t == 0:
            return t
    return nq


# -----------------------------------------------------------------------------
# Wrapper: weight packing + pallas_call
# -----------------------------------------------------------------------------
def attention_forward(params, q, k, v, num_heads, *, use_bf16=True):
    """Pallas TPU implementation of segment_anything Attention.forward."""
    B, Nq, E = q.shape
    Nk = k.shape[1]
    internal_dim = params["wq"].shape[1]
    assert internal_dim % num_heads == 0, "num_heads must divide internal_dim."
    H, dh = num_heads, internal_dim // num_heads
    mm_dtype = jnp.bfloat16 if use_bf16 else jnp.float32
    scale = 1.0 / math.sqrt(dh)

    # ---- weight packing (plain JAX, outside the kernel) ---------------------
    def per_head_w(w):                       # (E, I) -> (H, E, dh)
        return w.reshape(E, H, dh).transpose(1, 0, 2)

    def per_head_b(b):                       # (I,)   -> (H, 1, dh)
        return b.reshape(H, 1, dh)

    # Fold the 1/sqrt(dh) score scaling into the query projection weight+bias.
    wqkv = jnp.stack([per_head_w(params["wq"] * scale),
                      per_head_w(params["wk"]),
                      per_head_w(params["wv"])]).astype(mm_dtype)      # (3,H,E,dh)
    bqkv = jnp.stack([per_head_b(params["bq"] * scale),
                      per_head_b(params["bk"]),
                      per_head_b(params["bv"])]).astype(jnp.float32)   # (3,H,1,dh)
    wo_h = params["wo"].reshape(H, dh, E).astype(mm_dtype)             # (H,dh,E)
    bo = params["bo"].reshape(1, E).astype(jnp.float32)                # (1,E)

    qx = q.astype(mm_dtype)
    kx = k.astype(mm_dtype)
    vx = v.astype(mm_dtype)

    tq = _q_tile(Nq)
    nqt = Nq // tq

    # ---- explicit scoped-VMEM budget (v5e default is only 16 MiB) ----------
    bf = 2 if use_bf16 else 4
    block_bytes = (tq * E * bf + 2 * Nk * E * bf                  # q, k, v tiles
                   + 3 * E * dh * bf + 3 * dh * 4                 # stacked W/b
                   + dh * E * bf + E * 4                          # Wo, bo
                   + tq * E * q.dtype.itemsize)                   # out tile
    interm_bytes = (3 * tq * Nk * 4                               # scores/exp/p
                    + (tq + 2 * Nk) * dh * 4                      # projections
                    + 2 * tq * E * 4)                             # acc + partial
    vmem_limit = int(min(64 * 2**20,
                         max(32 * 2**20, 4 * (2 * block_bytes + interm_bytes))))

    kernel = make_attention_kernel(mm_dtype)
    return pl.pallas_call(
        kernel,
        grid_spec=pltpu.PrefetchScalarGridSpec(
            num_scalar_prefetch=0,
            grid=(B, nqt, H),                          # head axis = reduction, last
            in_specs=[
                pl.BlockSpec((1, tq, E), lambda b, t, h: (b, t, 0)),   # q tile
                pl.BlockSpec((1, Nk, E), lambda b, t, h: (b, 0, 0)),   # k (resident)
                pl.BlockSpec((1, Nk, E), lambda b, t, h: (b, 0, 0)),   # v (resident)
                pl.BlockSpec((3, 1, E, dh), lambda b, t, h: (0, h, 0, 0)),
                pl.BlockSpec((3, 1, 1, dh), lambda b, t, h: (0, h, 0, 0)),
                pl.BlockSpec((1, dh, E), lambda b, t, h: (h, 0, 0)),
                pl.BlockSpec((1, E), lambda b, t, h: (0, 0)),
            ],
            out_specs=pl.BlockSpec((1, tq, E), lambda b, t, h: (b, t, 0)),
            scratch_shapes=[pltpu.VMEM((tq, E), jnp.float32)],
        ),
        out_shape=jax.ShapeDtypeStruct((B, Nq, E), q.dtype),
        compiler_params=pltpu.CompilerParams(
            dimension_semantics=("parallel", "parallel", "arbitrary"),
            vmem_limit_bytes=vmem_limit),
    )(qx, kx, vx, wqkv, bqkv, wo_h, bo)


# -----------------------------------------------------------------------------
# Pure-JAX reference (mirrors the PyTorch module, f32 end-to-end)
# -----------------------------------------------------------------------------
def attention_reference(params, q, k, v, num_heads):
    internal_dim = params["wq"].shape[1]
    dh = internal_dim // num_heads
    qp = q @ params["wq"] + params["bq"]
    kp = k @ params["wk"] + params["bk"]
    vp = v @ params["wv"] + params["bv"]
    B, Nq, _ = qp.shape
    Nk = kp.shape[1]
    qh = qp.reshape(B, Nq, num_heads, dh).transpose(0, 2, 1, 3)
    kh = kp.reshape(B, Nk, num_heads, dh).transpose(0, 2, 1, 3)
    vh = vp.reshape(B, Nk, num_heads, dh).transpose(0, 2, 1, 3)
    attn = jnp.einsum("bhqd,bhkd->bhqk", qh, kh) / math.sqrt(dh)
    attn = jax.nn.softmax(attn, axis=-1)
    out = jnp.einsum("bhqk,bhkd->bhqd", attn, vh)
    out = out.transpose(0, 2, 1, 3).reshape(B, Nq, internal_dim)
    return out @ params["wo"] + params["bo"]


# -----------------------------------------------------------------------------
# Deterministic parameter init (nn.Linear-style uniform bounds)
# -----------------------------------------------------------------------------
def init_attention_params(key, embedding_dim, num_heads, downsample_rate=1):
    internal_dim = embedding_dim // downsample_rate
    assert internal_dim % num_heads == 0, "num_heads must divide internal_dim."

    def linear(k, d_in, d_out):
        kw, kb = jax.random.split(k)
        bound = 1.0 / math.sqrt(d_in)
        w = jax.random.uniform(kw, (d_in, d_out), jnp.float32, -bound, bound)
        b = jax.random.uniform(kb, (d_out,), jnp.float32, -bound, bound)
        return w, b

    kq, kk, kv, ko = jax.random.split(key, 4)
    wq, bq = linear(kq, embedding_dim, internal_dim)
    wk, bk = linear(kk, embedding_dim, internal_dim)
    wv, bv = linear(kv, embedding_dim, internal_dim)
    wo, bo = linear(ko, internal_dim, embedding_dim)
    return dict(wq=wq, bq=bq, wk=wk, bk=bk, wv=wv, bv=bv, wo=wo, bo=bo)


# -----------------------------------------------------------------------------
# Main
# -----------------------------------------------------------------------------
if __name__ == "__main__":
    root = jax.random.PRNGKey(0)
    kp1, kp2, kq, kk = jax.random.split(root, 4)

    embedding_dim, num_heads = 32, 4
    B, Nq, Nk = 2, 8, 64           # e.g. 8 point tokens attending to an 8x8 image

    q = jax.random.normal(kq, (B, Nq, embedding_dim), jnp.float32)
    kv = jax.random.normal(kk, (B, Nk, embedding_dim), jnp.float32)

    fwd = jax.jit(partial(attention_forward, num_heads=num_heads))

    # Case 1: self-attention config (downsample_rate=1, internal_dim == E)
    p1 = init_attention_params(kp1, embedding_dim, num_heads, downsample_rate=1)
    out1 = jax.block_until_ready(fwd(p1, q, q, q))
    ref1 = attention_reference(p1, q, q, q, num_heads)

    # Case 2: cross-attention config with downsampled internal dim
    p2 = init_attention_params(kp2, embedding_dim, num_heads, downsample_rate=2)
    out2 = jax.block_until_ready(fwd(p2, q, kv, kv))
    ref2 = attention_reference(p2, q, kv, kv, num_heads)

    assert out1.shape == (B, Nq, embedding_dim)
    assert out2.shape == (B, Nq, embedding_dim)
    # bf16 MXU operands vs. f32 reference -> modest tolerance
    assert jnp.allclose(out1, ref1, atol=2e-2, rtol=2e-2), \
        float(jnp.max(jnp.abs(out1 - ref1)))
    assert jnp.allclose(out2, ref2, atol=2e-2, rtol=2e-2), \
        float(jnp.max(jnp.abs(out2 - ref2)))
    print("KERNEL_OK")
</pallas_src>

<mosaic_0001>
module attributes {stable_mosaic.version = 11 : i64} {
  func.func @kernel(%arg0: i32, %arg1: i32, %arg2: i32, %arg3: memref<1x8x32xbf16, #tpu.memory_space<vmem>>, %arg4: memref<1x8x32xbf16, #tpu.memory_space<vmem>>, %arg5: memref<1x8x32xbf16, #tpu.memory_space<vmem>>, %arg6: memref<3x1x32x8xbf16, #tpu.memory_space<vmem>>, %arg7: memref<3x1x1x8xf32, #tpu.memory_space<vmem>>, %arg8: memref<1x8x32xbf16, #tpu.memory_space<vmem>>, %arg9: memref<1x32xf32, #tpu.memory_space<vmem>>, %arg10: memref<1x8x32xf32, #tpu.memory_space<vmem>>, %arg11: memref<8x32xf32, #tpu.memory_space<vmem>>) attributes {dimension_semantics = [#tpu.dimension_semantics<parallel>, #tpu.dimension_semantics<parallel>, #tpu.dimension_semantics<arbitrary>], iteration_bounds = array<i64: 2, 1, 4>, scalar_prefetch = 0 : i64, scratch_operands = 1 : i64, tpu.core_type = #tpu.core_type<tc>, window_params = [{transform_indices = @transform_0, window_bounds = array<i64: 1, 8, 32>}, {transform_indices = @transform_1, window_bounds = array<i64: 1, 8, 32>}, {transform_indices = @transform_2, window_bounds = array<i64: 1, 8, 32>}, {transform_indices = @transform_3, window_bounds = array<i64: 3, 1, 32, 8>}, {transform_indices = @transform_4, window_bounds = array<i64: 3, 1, 1, 8>}, {transform_indices = @transform_5, window_bounds = array<i64: 1, 8, 32>}, {pipeline_mode = #tpu.pipeline_mode<synchronous>, transform_indices = @transform_6, window_bounds = array<i64: 1, 32>}, {transform_indices = @transform_7, window_bounds = array<i64: 1, 8, 32>}]} {
    %c0_i32 = arith.constant 0 : i32
    %0 = arith.cmpi eq, %arg2, %c0_i32 : i32
    %1 = arith.extui %0 : i1 to i32
    %c0_i32_0 = arith.constant 0 : i32
    %2 = arith.cmpi ne, %1, %c0_i32_0 : i32
    scf.if %2 {
      %cst_46 = arith.constant 0.000000e+00 : f32
      %56 = vector.broadcast %cst_46 : f32 to vector<8x32xf32>
      %c0_47 = arith.constant 0 : index
      %c0_48 = arith.constant 0 : index
      %57 = vector.load %arg11[%c0_47, %c0_48] : memref<8x32xf32, #tpu.memory_space<vmem>>, vector<8x32xf32>
      tpu.vector_store %arg11[%c0_47, %c0_48], %56 {strides = array<i32>} : memref<8x32xf32, #tpu.memory_space<vmem>>, vector<8x32xf32>,
    } else {
    }
    %c0 = arith.constant 0 : index
    %c0_1 = arith.constant 0 : index
    %c0_2 = arith.constant 0 : index
    %3 = vector.load %arg3[%c0, %c0_1, %c0_2] : memref<1x8x32xbf16, #tpu.memory_space<vmem>>, vector<1x8x32xbf16>
    %4 = vector.shape_cast %3 : vector<1x8x32xbf16> to vector<8x32xbf16>
    %c0_3 = arith.constant 0 : index
    %c0_4 = arith.constant 0 : index
    %c0_5 = arith.constant 0 : index
    %c0_6 = arith.constant 0 : index
    %5 = vector.load %arg6[%c0_3, %c0_4, %c0_5, %c0_6] : memref<3x1x32x8xbf16, #tpu.memory_space<vmem>>, vector<1x1x32x8xbf16>
    %6 = vector.shape_cast %5 : vector<1x1x32x8xbf16> to vector<32x8xbf16>
    %cst = arith.constant dense<0.000000e+00> : vector<8x8xf32>
    %7 = tpu.matmul %4, %6, %cst {dimension_numbers = #tpu.dot_dimension_numbers<[1], [0], [0], [1], [0, 0, 1, 1], [], []>} : vector<8x32xbf16>, vector<32x8xbf16>, vector<8x8xf32> -> vector<8x8xf32>
    %c0_7 = arith.constant 0 : index
    %c0_8 = arith.constant 0 : index
    %c0_9 = arith.constant 0 : index
    %c0_10 = arith.constant 0 : index
    %8 = vector.load %arg7[%c0_7, %c0_8, %c0_9, %c0_10] : memref<3x1x1x8xf32, #tpu.memory_space<vmem>>, vector<1x1x1x8xf32>
    %9 = vector.shape_cast %8 : vector<1x1x1x8xf32> to vector<1x8xf32>
    %10 = vector.broadcast %9 : vector<1x8xf32> to vector<8x8xf32>
    %11 = arith.addf %7, %10 : vector<8x8xf32>
    %12 = arith.truncf %11 : vector<8x8xf32> to vector<8x8xbf16>
    %c0_11 = arith.constant 0 : index
    %c0_12 = arith.constant 0 : index
    %c0_13 = arith.constant 0 : index
    %13 = vector.load %arg4[%c0_11, %c0_12, %c0_13] : memref<1x8x32xbf16, #tpu.memory_space<vmem>>, vector<1x8x32xbf16>
    %14 = vector.shape_cast %13 : vector<1x8x32xbf16> to vector<8x32xbf16>
    %c1 = arith.constant 1 : index
    %c0_14 = arith.constant 0 : index
    %c0_15 = arith.constant 0 : index
    %c0_16 = arith.constant 0 : index
    %15 = vector.load %arg6[%c1, %c0_14, %c0_15, %c0_16] : memref<3x1x32x8xbf16, #tpu.memory_space<vmem>>, vector<1x1x32x8xbf16>
    %16 = vector.shape_cast %15 : vector<1x1x32x8xbf16> to vector<32x8xbf16>
    %cst_17 = arith.constant dense<0.000000e+00> : vector<8x8xf32>
    %17 = tpu.matmul %14, %16, %cst_17 {dimension_numbers = #tpu.dot_dimension_numbers<[1], [0], [0], [1], [0, 0, 1, 1], [], []>} : vector<8x32xbf16>, vector<32x8xbf16>, vector<8x8xf32> -> vector<8x8xf32>
    %c1_18 = arith.constant 1 : index
    %c0_19 = arith.constant 0 : index
    %c0_20 = arith.constant 0 : index
    %c0_21 = arith.constant 0 : index
    %18 = vector.load %arg7[%c1_18, %c0_19, %c0_20, %c0_21] : memref<3x1x1x8xf32, #tpu.memory_space<vmem>>, vector<1x1x1x8xf32>
    %19 = vector.shape_cast %18 : vector<1x1x1x8xf32> to vector<1x8xf32>
    %20 = vector.broadcast %19 : vector<1x8xf32> to vector<8x8xf32>
    %21 = arith.addf %17, %20 : vector<8x8xf32>
    %22 = arith.truncf %21 : vector<8x8xf32> to vector<8x8xbf16>
    %c0_22 = arith.constant 0 : index
    %c0_23 = arith.constant 0 : index
    %c0_24 = arith.constant 0 : index
    %23 = vector.load %arg5[%c0_22, %c0_23, %c0_24] : memref<1x8x32xbf16, #tpu.memory_space<vmem>>, vector<1x8x32xbf16>
    %24 = vector.shape_cast %23 : vector<1x8x32xbf16> to vector<8x32xbf16>
    %c2 = arith.constant 2 : index
    %c0_25 = arith.constant 0 : index
    %c0_26 = arith.constant 0 : index
    %c0_27 = arith.constant 0 : index
    %25 = vector.load %arg6[%c2, %c0_25, %c0_26, %c0_27] : memref<3x1x32x8xbf16, #tpu.memory_space<vmem>>, vector<1x1x32x8xbf16>
    %26 = vector.shape_cast %25 : vector<1x1x32x8xbf16> to vector<32x8xbf16>
    %cst_28 = arith.constant dense<0.000000e+00> : vector<8x8xf32>
    %27 = tpu.matmul %24, %26, %cst_28 {dimension_numbers = #tpu.dot_dimension_numbers<[1], [0], [0], [1], [0, 0, 1, 1], [], []>} : vector<8x32xbf16>, vector<32x8xbf16>, vector<8x8xf32> -> vector<8x8xf32>
    %c2_29 = arith.constant 2 : index
    %c0_30 = arith.constant 0 : index
    %c0_31 = arith.constant 0 : index
    %c0_32 = arith.constant 0 : index
    %28 = vector.load %arg7[%c2_29, %c0_30, %c0_31, %c0_32] : memref<3x1x1x8xf32, #tpu.memory_space<vmem>>, vector<1x1x1x8xf32>
    %29 = vector.shape_cast %28 : vector<1x1x1x8xf32> to vector<1x8xf32>
    %30 = vector.broadcast %29 : vector<1x8xf32> to vector<8x8xf32>
    %31 = arith.addf %27, %30 : vector<8x8xf32>
    %32 = arith.truncf %31 : vector<8x8xf32> to vector<8x8xbf16>
    %cst_33 = arith.constant dense<0.000000e+00> : vector<8x8xf32>
    %33 = tpu.matmul %12, %22, %cst_33 {dimension_numbers = #tpu.dot_dimension_numbers<[1], [1], [0], [0], [0, 0, 1, 0], [], []>} : vector<8x8xbf16>, vector<8x8xbf16>, vector<8x8xf32> -> vector<8x8xf32>
    %cst_34 = arith.constant dense<0xFF800000> : vector<8xf32>
    %34 = vector.multi_reduction <maximumf>, %33, %cst_34 [1] : vector<8x8xf32> to vector<8xf32>
    %35 = vector.shape_cast %34 : vector<8xf32> to vector<8x1xf32>
    %36 = vector.broadcast %35 : vector<8x1xf32> to vector<8x8xf32>
    %37 = arith.subf %33, %36 : vector<8x8xf32>
    %38 = math.exp %37 : vector<8x8xf32>
    %cst_35 = arith.constant dense<0.000000e+00> : vector<8xf32>
    %39 = vector.multi_reduction <add>, %38, %cst_35 [1] : vector<8x8xf32> to vector<8xf32>
    %40 = vector.shape_cast %39 : vector<8xf32> to vector<8x1xf32>
    %41 = tpu.reciprocal %40 {approx = true} : vector<8x1xf32> -> vector<8x1xf32>
    %42 = vector.broadcast %41 : vector<8x1xf32> to vector<8x8xf32>
    %43 = arith.mulf %38, %42 : vector<8x8xf32>
    %44 = arith.truncf %43 : vector<8x8xf32> to vector<8x8xbf16>
    %cst_36 = arith.constant dense<0.000000e+00> : vector<8x8xf32>
    %45 = tpu.matmul %44, %32, %cst_36 {dimension_numbers = #tpu.dot_dimension_numbers<[1], [0], [0], [1], [0, 0, 1, 1], [], []>} : vector<8x8xbf16>, vector<8x8xbf16>, vector<8x8xf32> -> vector<8x8xf32>
    %c0_37 = arith.constant 0 : index
    %c0_38 = arith.constant 0 : index
    %46 = vector.load %arg11[%c0_37, %c0_38] : memref<8x32xf32, #tpu.memory_space<vmem>>, vector<8x32xf32>
    %47 = arith.truncf %45 : vector<8x8xf32> to vector<8x8xbf16>
    %c0_39 = arith.constant 0 : index
    %c0_40 = arith.constant 0 : index
    %c0_41 = arith.constant 0 : index
    %48 = vector.load %arg8[%c0_39, %c0_40, %c0_41] : memref<1x8x32xbf16, #tpu.memory_space<vmem>>, vector<1x8x32xbf16>
    %49 = vector.shape_cast %48 : vector<1x8x32xbf16> to vector<8x32xbf16>
    %cst_42 = arith.constant dense<0.000000e+00> : vector<8x32xf32>
    %50 = tpu.matmul %47, %49, %cst_42 {dimension_numbers = #tpu.dot_dimension_numbers<[1], [0], [0], [1], [0, 0, 1, 1], [], []>} : vector<8x8xbf16>, vector<8x32xbf16>, vector<8x32xf32> -> vector<8x32xf32>
    %51 = arith.addf %46, %50 : vector<8x32xf32>
    %c0_43 = arith.constant 0 : index
    %c0_44 = arith.constant 0 : index
    %52 = vector.load %arg11[%c0_43, %c0_44] : memref<8x32xf32, #tpu.memory_space<vmem>>, vector<8x32xf32>
    tpu.vector_store %arg11[%c0_43, %c0_44], %51 {strides = array<i32>} : memref<8x32xf32, #tpu.memory_space<vmem>>, vector<8x32xf32>,
    %c3_i32 = arith.constant 3 : i32
    %53 = arith.cmpi eq, %arg2, %c3_i32 : i32
    %54 = arith.extui %53 : i1 to i32
    %c0_i32_45 = arith.constant 0 : i32
    %55 = arith.cmpi ne, %54, %c0_i32_45 : i32
    scf.if %55 {
      %c0_46 = arith.constant 0 : index
      %c0_47 = arith.constant 0 : index
      %56 = vector.load %arg11[%c0_46, %c0_47] : memref<8x32xf32, #tpu.memory_space<vmem>>, vector<8x32xf32>
      %c0_48 = arith.constant 0 : index
      %c0_49 = arith.constant 0 : index
      %57 = vector.load %arg9[%c0_48, %c0_49] : memref<1x32xf32, #tpu.memory_space<vmem>>, vector<1x32xf32>
      %58 = vector.broadcast %57 : vector<1x32xf32> to vector<8x32xf32>
      %59 = arith.addf %56, %58 : vector<8x32xf32>
      %c0_50 = arith.constant 0 : index
      %c0_51 = arith.constant 0 : index
      %c0_52 = arith.constant 0 : index
      %60 = vector.load %arg10[%c0_50, %c0_51, %c0_52] : memref<1x8x32xf32, #tpu.memory_space<vmem>>, vector<1x8x32xf32>
      %61 = vector.shape_cast %60 : vector<1x8x32xf32> to vector<8x32xf32>
      %62 = vector.shape_cast %59 : vector<8x32xf32> to vector<1x8x32xf32>
      tpu.vector_store %arg10[%c0_50, %c0_51, %c0_52], %62 {strides = array<i32>} : memref<1x8x32xf32, #tpu.memory_space<vmem>>, vector<1x8x32xf32>,
    } else {
    }
    return
  }
  func.func @transform_0(%arg0: i32, %arg1: i32, %arg2: i32) -> (i32, i32, i32) {
    %c0_i32 = arith.constant 0 : i32
    %c0_i32_0 = arith.constant 0 : i32
    return %arg0, %arg1, %c0_i32 : i32, i32, i32
  }
  func.func @transform_1(%arg0: i32, %arg1: i32, %arg2: i32) -> (i32, i32, i32) {
    %c0_i32 = arith.constant 0 : i32
    %c0_i32_0 = arith.constant 0 : i32
    %c0_i32_1 = arith.constant 0 : i32
    return %arg0, %c0_i32, %c0_i32_0 : i32, i32, i32
  }
  func.func @transform_2(%arg0: i32, %arg1: i32, %arg2: i32) -> (i32, i32, i32) {
    %c0_i32 = arith.constant 0 : i32
    %c0_i32_0 = arith.constant 0 : i32
    %c0_i32_1 = arith.constant 0 : i32
    return %arg0, %c0_i32, %c0_i32_0 : i32, i32, i32
  }
  func.func @transform_3(%arg0: i32, %arg1: i32, %arg2: i32) -> (i32, i32, i32, i32) {
    %c0_i32 = arith.constant 0 : i32
    %c0_i32_0 = arith.constant 0 : i32
    %c0_i32_1 = arith.constant 0 : i32
    %c0_i32_2 = arith.constant 0 : i32
    return %c0_i32, %arg2, %c0_i32_0, %c0_i32_1 : i32, i32, i32, i32
  }
  func.func @transform_4(%arg0: i32, %arg1: i32, %arg2: i32) -> (i32, i32, i32, i32) {
    %c0_i32 = arith.constant 0 : i32
    %c0_i32_0 = arith.constant 0 : i32
    %c0_i32_1 = arith.constant 0 : i32
    %c0_i32_2 = arith.constant 0 : i32
    return %c0_i32, %arg2, %c0_i32_0, %c0_i32_1 : i32, i32, i32, i32
  }
  func.func @transform_5(%arg0: i32, %arg1: i32, %arg2: i32) -> (i32, i32, i32) {
    %c0_i32 = arith.constant 0 : i32
    %c0_i32_0 = arith.constant 0 : i32
    %c0_i32_1 = arith.constant 0 : i32
    return %arg2, %c0_i32, %c0_i32_0 : i32, i32, i32
  }
  func.func @transform_6(%arg0: i32, %arg1: i32, %arg2: i32) -> (i32, i32) {
    %c0_i32 = arith.constant 0 : i32
    %c0_i32_0 = arith.constant 0 : i32
    %c0_i32_1 = arith.constant 0 : i32
    return %c0_i32, %c0_i32_0 : i32, i32
  }
  func.func @transform_7(%arg0: i32, %arg1: i32, %arg2: i32) -> (i32, i32, i32) {
    %c0_i32 = arith.constant 0 : i32
    %c0_i32_0 = arith.constant 0 : i32
    return %arg0, %arg1, %c0_i32 : i32, i32, i32
  }
}

</mosaic_0001>

<bundles_post_ra>
// kernel: attention_forward.1
= control target key start
LH: loop header
LB: loop body
LE: loop exit
PB: predicated region body
PF: predicated region fallthrough
CT: control target
= control target key end

     0   :  { %s1449_s0 = inlined_call_operand.vmem [shape: bf16[2,8,32], index: 0, kind: input, shape index: {}]   ;;  %s1450_s1 = inlined_call_operand.vmem [shape: bf16[2,8,32], index: 1, kind: input, shape index: {}]   ;;  %s1451_s2 = inlined_call_operand.vmem [shape: bf16[2,8,32], index: 2, kind: input, shape index: {}]   ;;  %s1452_s3 = inlined_call_operand.vmem [shape: bf16[3,4,32,8], index: 3, kind: input, shape index: {}]   ;;  %s1453_s4 = inlined_call_operand.vmem [shape: f32[3,4,1,8], index: 4, kind: input, shape index: {}]   ;;  %s1454_s5 = inlined_call_operand.vmem [shape: bf16[4,8,32], index: 5, kind: input, shape index: {}]   ;;  %s1455_s6 = inlined_call_operand.vmem [shape: f32[1,32], index: 6, kind: input, shape index: {}]   ;;  %s1456_s7 = inlined_call_operand.hbm [shape: f32[2,8,32], index: 7, kind: output, shape index: {}]  }
   0x1   :  { %1465 = sst [smem:[#allocation17_spill]] %s1452_s3 }
   0x2   :  { %1466 = sst [smem:[#allocation18_spill]] %s1453_s4 }
   0x3   :  { %12 = vsyncpa [#allocation6], 0 }
   0x4   :  { %14 = vsyncpa [#allocation6 + $0x1], 0  ;;  %s1223_s24 = smov 0   ;;  %s1225_s25 = smov 0  }
   0x5   :  { %s1227_s26 = smov 0   ;;  %s1229_s27 = smov 0  }
   0x6   :  { %s1231_s28 = smov 0   ;;  %s1233_s29 = smov 0  }
   0x7   :  { %s1235_s30 = smov 0   ;;  %s1237_s8 = smov 0  }
   0x8   :  { %s1239_s9 = smov 0   ;;  %s1241_s10 = smov 0  }
   0x9 LB: > { %1467 = sst [smem:[#allocation8_spill]] %s1152_s26  ;;  %s905_s11 = sadd.s32 4294967295, %s1180_s10   ;;  %s1180_s10 = sphi %s1241_s10, %s20_s10   ;;  %s1176_s9 = sphi %s1239_s9, %s1490_s9   ;;  %s1172_s8 = sphi %s1237_s8, %s1489_s8   ;;  %s1168_s30 = sphi %s1235_s30, %s1488_s30   ;;  %s1164_s29 = sphi %s1233_s29, %s1487_s29   ;;  %s1160_s28 = sphi %s1231_s28, %s1493_s28   ;;  %s1156_s27 = sphi %s1229_s27, %s1485_s27   ;;  %s1152_s26 = sphi %s1227_s26, %s1484_s26   ;;  %s1148_s25 = sphi %s1225_s25, %s1492_s25   ;;  %s1144_s24 = sphi %s1223_s24, %s1491_s24  }
   0xa   : > { %1468 = sst [smem:[#allocation9_spill]] %s1160_s28  ;;  %s906_s12 = sadd.s32 4294967294, %s1180_s10  }
   0xb   : > { %1469 = sst [smem:[#allocation10_spill]] %s1172_s8  ;;  %s32_s13 = sadd.s32 1, %s1172_s8 }
   0xc   : > { %1470 = sst [smem:[#allocation11_spill]] %s1176_s9  ;;  %s39_s14 = sadd.s32 1, %s1176_s9 }
   0xd   : > { %p33_p0 = scmp.ge.s32.totalorder %s32_s13, 4  ;;  %s126_s15 = sadd.s32 1, %s1160_s28 }
   0xe   : > { %p133_p1 = scmp.ne.s32.totalorder %s1160_s28, %s1156_s27  ;;  %p134_p2 = scmp.eq.s32.totalorder %s1180_s10, 0 }
   0xf   : > { %s1495_s13 = smov (%p33_p0, %s32_s13), 0  ;;  %s1497_s14 = smov (!%p33_p0, %s39_s14), %s1176_s9 }
  0x10   : > { %1471 = sst [smem:[#allocation12_spill]] %s1495_s13  ;;  %s123_s16 = ssub.s32 %s1172_s8, %s1495_s13 }
  0x11   : > { %p1286_p3 = por %p134_p2, %p133_p1  ;;  %p41_p4 = scmp.ge.s32.totalorder %s1497_s14, 2 }
  0x12   : > { %p124_p5 = scmp.eq.s32.totalorder %s123_s16, 0  ;;  %s227_s18 = sadd.s32 1, %s1152_s26 }
  0x13   : > { %p237_p6 = scmp.ne.s32.totalorder %s1152_s26, %s1148_s25  ;;  %s1499_s14 = smov (%p41_p4, %s1497_s14), 0 }
  0x14   : > { %1473 = sst [smem:[#allocation13_spill]] %s1499_s14  ;;  %s222_s20 = ssub.s32 %s1176_s9, %s1499_s14 }
  0x15   : > { %s1296_s19 = scalar_select %p124_p5, %s1160_s28, %s126_s15  }
  0x16   : > { %p238_p7 = scmp.eq.s32.totalorder %s905_s11, 7  ;;  %p225_p8 = scmp.eq.s32.totalorder %s222_s20, 0 }
  0x17   : > { %1474 = sst [smem:[#allocation14_spill]] %s1296_s19  ;;  %p243_p9 = scmp.ne.s32.totalorder %s1148_s25, %s1144_s24 }
  0x18   : > { %p1302_p10 = por %p238_p7, %p237_p6  ;;  %p244_p11 = scmp.eq.s32.totalorder %s906_s12, 7 }
  0x19   : > { %s1307_s22 = scalar_select %p225_p8, %s1152_s26, %s227_s18  }
  0x1a   : > { %p1309_p12 = por %p244_p11, %p243_p9  ;;  %p908_p13 = scmp.ge.s32.totalorder %s1180_s10, 8 }
  0x1b   : > { %1476 = sst [smem:[#allocation15_spill]] %s1307_s22 }
  0x1c   : > { %s1477_s23 = scalar_select %p1309_p12, 1, 0 }
  0x1d   : > { %263 = sbr.rel (%p908_p13) target bundleno = 62 (0x3e), region = 20 }
  0x1e   : > { %1478 = sst [smem:[#allocation16_spill]] %s1477_s23 }
  0x22   : > { %290 = sbr.rel (!%p1286_p3) target bundleno = 50 (0x32), region = 36  ;;  %s292_s11 = sand.u32 (%p1286_p3), 1, %s1160_s28  }
  0x23   : > { %s963_s15 = sshll.u32 (%p1286_p3), %s1172_s8, 4  ;;  %s970_s16 = smul.u32 (%p1286_p3), 48, %s292_s11 }
  0x24   : > { %s1479_s3 = sld [smem:[#allocation17_spill]] (%p1286_p3) }
  0x25   : > { %s294_s18 = scalar_lea.vmem (%p1286_p3), [#allocation3], %s970_s16 }
  0x2a   : > { %s297_s12 = scalar_lea.vmem %s1479_s3, %s963_s15 }
  0x2b   : > { %v314_v0 = vld [vmem:[%s297_s12] sm:$0xff]   ;;  %v318_v1 = vld [vmem:[%s297_s12 + $0x8] sm:$0xff]  }
  0x2c   : > { %v322_v2 = vld [vmem:[%s297_s12 + $0x40] sm:$0xff]   ;;  %315 = vst [vmem:[%s294_s18] sm:$0xff] %v314_v0   ;;  %v326_v3 = vld [vmem:[%s297_s12 + $0x48] sm:$0xff]  }
  0x2d   : > { %319 = vst [vmem:[%s294_s18 + $0x8] sm:$0xff] %v318_v1   ;;  %v330_v4 = vld [vmem:[%s297_s12 + $0x80] sm:$0xff]   ;;  %v334_v5 = vld [vmem:[%s297_s12 + $0x88] sm:$0xff]  }
  0x2e   : > { %323 = vst [vmem:[%s294_s18 + $0x10] sm:$0xff] %v322_v2  }
  0x2f   : > { %327 = vst [vmem:[%s294_s18 + $0x18] sm:$0xff] %v326_v3  }
  0x30   : > { %331 = vst [vmem:[%s294_s18 + $0x20] sm:$0xff] %v330_v4  }
  0x31   : > { %335 = vst [vmem:[%s294_s18 + $0x28] sm:$0xff] %v334_v5  }
  0x32 PF: > { %385 = sbr.rel (!%p1286_p3) target bundleno = 62 (0x3e), region = 77  ;;  %s387_s14 = sand.u32 (%p1286_p3), 1, %s1160_s28  }
  0x33   : > { %s1480_s4 = sld [smem:[#allocation18_spill]] (%p1286_p3)  ;;  %s971_s20 = smul.u32 (%p1286_p3), 3, %s387_s14 }
  0x35   : > { %s389_s3 = scalar_lea.vmem (%p1286_p3), [#allocation4], %s971_s20 }
  0x39   : > { %s390_s16 = scalar_lea.vmem %s1480_s4, %s1172_s8 }
  0x3a   : > { %v407_v6 = vld [vmem:[%s390_s16] sm:$0x1]  ;;  %v409_v7 = vld [vmem:[%s390_s16 + $0x4] sm:$0x1]  ;;  %v411_v8 = vld [vmem:[%s390_s16 + $0x8] sm:$0x1] }
  0x3b   : > { %408 = vst [vmem:[%s389_s3] sm:$0x1] %v407_v6 }
  0x3c   : > { %410 = vst [vmem:[%s389_s3 + $0x1] sm:$0x1] %v409_v7 }
  0x3d   : > { %412 = vst [vmem:[%s389_s3 + $0x2] sm:$0x1] %v411_v8 }
  0x3e PF: > { %p911_p0 = scmp.ge.s32.totalorder %s1180_s10, 1  ;;  %p440_p1 = scmp.lt.s32.totalorder %s1180_s10, 9 }
  0x40   : > { %p441_p2 = pnand %p911_p0, %p440_p1 }
  0x41   : > { %s447_s17 = sand.u32 (!%p441_p2), 1, %s1156_s27   ;;  %s1460_s12 = sand.u32 (!%p441_p2), 1, %s1148_s25  }
  0x42   : > { %444 = sbr.rel (%p441_p2) target bundleno = 896 (0x380), region = 115  ;;  %s1334_s3 = sshll.u32 (!%p441_p2), %s1460_s12, 3 }
  0x43   : > { %s972_s18 = smul.u32 (!%p441_p2), 48, %s447_s17  ;;  %p508_p3 = scmp.lt.s32.totalorder (!%p441_p2), %s1168_s30, 1 }
  0x44   : > { %s973_s14 = smul.u32 (!%p441_p2), 3, %s447_s17  ;;  %p523_p4 = scmp.lt.s32.totalorder (!%p441_p2), %s1164_s29, 3 }
  0x45   : > { %s1359_s23 = scalar_lea.vmem (!%p441_p2), [#allocation3], %s972_s18  ;;  %s507_s20 = scalar_lea.vmem (!%p441_p2), [#allocation5], %s1334_s3 }
  0x46   : > { %s1361_s4 = scalar_lea.vmem (!%p441_p2), [#allocation4], %s973_s14  ;;  %p917_p5 = scmp.ne.s32.totalorder (!%p441_p2), %s1164_s29, 0 }
  0x47   : > { %s509_s11 = scalar_select %p508_p3, %s1168_s30, 1 }
  0x48   : > { %s524_s15 = scalar_select %p523_p4, %s1164_s29, 3 }
  0x49   : > { %s1340_s16 = sshll.u32 %s509_s11, 2  ;;  %531 = sbr.rel (%p917_p5) target bundleno = 80 (0x50), region = 127 }
  0x4a   : > { %s514_s27 = scalar_lea.vmem %s1449_s0, %s1340_s16  ;;  %s518_s12 = scalar_lea.vmem %s1450_s1, %s1340_s16 }
  0x4b   : > { %s522_s17 = scalar_lea.vmem %s1451_s2, %s1340_s16  ;;  %s916_s28 = sshll.u32 %s524_s15, 2 }
  0x4c   : > { %s1357_s11 = scalar_lea.vmem %s1454_s5, %s916_s28 }
  0x4e   : > { %vm532_vm0 = vcmask 261120   ;;  %v1182_v9 = vmov 0.0  }
  0x4f   : > { %533 = vst.msk [vmem:[#allocation2] sm:$0xff] %vm532_vm0, %v1182_v9 }
  0x50 PF: > { %v965_v10 = vld [vmem:[%s1359_s23 + $0x8] sm:$0xff]  ;;  %v967_v11 = vld [vmem:[%s1359_s23 + $0x18] sm:$0xff]  ;;  %v964_v12 = vld [vmem:[%s1359_s23] sm:$0xff]  ;;  %vm555_vm1 = vcmask 261120   ;;  %vm653_vm2 = vcmask 64512   ;;  %vm688_vm3 = vcmask 1043456  }
  0x51   : > { %565 = vmatpush.bf16.msra.mxu0 %v965_v10  ;;  %605 = vmatpush.bf16.msra.mxu1 %v967_v11  ;;  %v966_v13 = vld [vmem:[%s1359_s23 + $0x10] sm:$0xff]  ;;  %v534_v14 = vld [vmem:[%s514_s27] sm:$0xf]  ;;  %v968_v28 = vld [vmem:[%s1359_s23 + $0x20] sm:$0xff]  ;;  %p958_p6 = scmp.ne.s32.totalorder %s1164_s29, 3 }
  0x52   : > { %v573_v15 = vld [vmem:[%s518_s12] sm:$0xf]  ;;  %v1063_v16 = vld [vmem:[%s1361_s4 + $0x1] ss:$0 sm:$0xff]  ;;  %v1062_v19 = vld [vmem:[%s1361_s4] ss:$0 sm:$0xff] }
  0x53   : > { %v969_v27 = vld [vmem:[%s1359_s23 + $0x28] sm:$0xff]  ;;  %v1064_v33 = vld [vmem:[%s1361_s4 + $0x2] ss:$0 sm:$0xff] }
  0x54   : > { %645 = vmatpush.bf16.msra.mxu2 %v969_v27  ;;  %v613_v29 = vld [vmem:[%s522_s17] sm:$0xf] }
  0x55   : > { %566 = vmatpush.bf16.msra.mxu0 %v964_v12  ;;  %606 = vmatpush.bf16.msra.mxu1 %v966_v13  ;;  %v707_v44 = vld [vmem:[%s1357_s11] sm:$0xf] }
  0x56   : > { %v712_v45 = vsel %vm688_vm3, %v707_v44, 0  ;;  %v705_v53 = vld [vmem:[#allocation2] sm:$0xff] }
  0x58   : > { %926 = vmatmul.msk.bf16.vlgmr.msra.gmra.mxu0 %vm555_vm1, %v534_v14  ;;  %940 = vmatmul.msk.bf16.vlgmr.msra.gmra.mxu1 %vm555_vm1, %v573_v15 }
  0x59   : > { %646 = vmatpush.bf16.msra.mxu2 %v968_v28  ;;  %721 = vmatpush.bf16.msrb.mxu1 %v712_v45 }
  0x5c   : > { %954 = vmatmul.msk.bf16.vlgmr.msra.gmra.mxu2 %vm555_vm1, %v613_v29 }
  0xd5   : > { %v568_v17 = vpop.f32.mrf.mxu0  ;;  %v608_v18 = vpop.f32.mrf.mxu1 }
  0xd6   : > { %v609_v20 = vadd.f32 %v1063_v16, %v608_v18  ;;  %v569_v22 = vadd.f32 %v1062_v19, %v568_v17 }
  0xd8   : > { %v612_v21 = vpack.c.bf16 %v609_v20, %v609_v20  ;;  %v572_v26 = vpack.c.bf16 %v569_v22, %v569_v22 }
  0xda   : > { %v658_v23 = vsel %vm653_vm2, %v612_v21, 0 }
  0xdb   : > { %667 = vmatpush.bf16.xpose.msra.mxu3 %v658_v23 }
  0xdd   : > { %v570_v24 = vpop.f32.mrf.mxu0  ;;  %v610_v25 = vpop.f32.mrf.mxu1 }
  0xdf   : > { %v648_v34 = vpop.f32.mrf.mxu2 }
  0xe0   : > { %v649_v36 = vadd.f32 %v1064_v33, %v648_v34 }
  0xe2   : > { %955 = vmatmul.msk.bf16.vlgmr.msra.gmra.mxu3 %vm653_vm2, %v572_v26  ;;  %v652_v38 = vpack.c.bf16 %v649_v36, %v649_v36 }
  0xe4   : > { %v690_v40 = vsel %vm688_vm3, %v652_v38, 0 }
  0xe5   : > { %699 = vmatpush.bf16.msrb.mxu0 %v690_v40 }
  0xe7   : > { %v650_v41 = vpop.f32.mrf.mxu2 }
 0x165   : > { %v669_v30 = vpop.f32.mrf.mxu3 }
 0x166   : > { %v673_v31 = vsel %vm653_vm2, %v669_v30, -inf }
 0x167   : > { %674 = vmax.xlane.f32.xlu0 %v673_v31 }
 0x16d   : > { %v671_v32 = vpop.f32.mrf.mxu3 }
 0x1da   : > { %v675_v35 = vpop.xlane.xlu0 %674 }
 0x1db   : > { %v676_v37 = vsub.f32 %v669_v30, %v675_v35 }
 0x1dd   : > { %v677_v39 = vmul.f32 1.442695, %v676_v37 }
 0x1df   : > { %1065 = vpow2.f32 %v677_v39 }
 0x1e5   : > { %v1066_v42 = vpop.eup %1065 }
 0x1e6   : > { %v679_v43 = vsel %vm653_vm2, %v1066_v42, 0.0 }
 0x1e7   : > { %680 = vadd.xlane.f32.xlu0 %v679_v43 }
 0x25a   : > { %v681_v46 = vpop.xlane.xlu0 %680 }
 0x25b   : > { %1067 = vrcp.f32 %v681_v46 }
 0x261   : > { %v1068_v47 = vpop.eup %1067 }
 0x262   : > { %v683_v48 = vmul.f32 %v1068_v47, %v1066_v42 }
 0x264   : > { %v684_v49 = vpack.c.bf16 %v683_v48, %v683_v48 }
 0x266   : > { %956 = vmatmul.msk.bf16.vlgmr.msrb.gmra.mxu0 %vm653_vm2, %v684_v49 }
 0x2e3   : > { %v701_v50 = vpop.f32.mrf.mxu0 }
 0x2e4   : > { %v706_v51 = vpack.c.bf16 %v701_v50, %v701_v50 }
 0x2e6   : > { %957 = vmatmul.msk.bf16.vlgmr.msrb.gmra.mxu1 %vm653_vm2, %v706_v51 }
 0x2eb   : > { %v703_v52 = vpop.f32.mrf.mxu0 }
 0x363   : > { %v723_v54 = vpop.f32.mrf.mxu1 }
 0x364   : > { %v727_v55 = vadd.f32 %v723_v54, %v705_v53 }
 0x366   : > { %728 = vst.msk [vmem:[#allocation2] sm:$0xff] %vm555_vm1, %v727_v55 }
 0x367   : > { %732 = sbr.rel (%p958_p6) target bundleno = 881 (0x371), region = 131 }
 0x36b   : > { %v725_v56 = vpop.f32.mrf.mxu1 }
 0x36c   : > { %v1069_v58 = vld [vmem:[%s1455_s6] ss:$0 sm:$0xff] }
 0x36d   : > { %v733_v57 = vld [vmem:[#allocation2] sm:$0xff] }
 0x36e   : > { %v738_v59 = vadd.f32 %v1069_v58, %v733_v57 }
 0x370   : > { %739 = vst.msk [vmem:[%s507_s20] sm:$0xff] %vm555_vm1, %v738_v59 }
 0x371 PF: > { %s960_s13 = sshll.u32 %s1168_s30, 3  ;;  %s754_s23 = sshll.u32 %s507_s20, 4  ;;  %s755_s23 = int_to_ptr.vmem [resolvable:$true] %s754_s23 }
 0x372   : > { %s752_s29 = scalar_lea.hbm %s1456_s7, %s960_s13  ;;  %s1481_s18 = sand.u32 1, %s1148_s25  }
 0x373   : > { %s756_s12 = sshll.u32 %s752_s29, 4  ;;  %s741_s14 = scalar_lea.sflag [#allocation6], %s1481_s18  ;;  %s757_s12 = int_to_ptr.hbm [resolvable:$true] %s756_s12 }
 0x374   : > { %s1084_s15 = sshra.s32 %s757_s12, 4  ;;  %s1090_s17 = scalar_lea.hbm %s1456_s7, 16  ;;  %s1085_s15 = int_to_ptr.hbm [resolvable:$true] %s1084_s15 }
 0x375   : > { %s1086_s16 = scalar_lea.hbm %s1085_s15, 8  ;;  %p1091_p11 = scmp.lt.s32.totalorder %s1085_s15, %s1456_s7 }
 0x376   : > { %p1087_p7 = scmp.ne.s32.totalorder %s1085_s15, %s1086_s16  ;;  %p1092_p13 = scmp.lt.s32.totalorder %s1090_s17, %s1086_s16 }
 0x378   : > { %p1088_p8 = pnand %p1087_p7, %p1302_p10  ;;  %p1093_p0 = por %p1092_p13, %p1091_p11 }
 0x37a   : > { %p1089_p9 = pneg %p1088_p8 }
 0x37c   : > { %p1094_p1 = pnand %p1093_p0, %p1089_p9 }
 0x37e   : > { %1097 = shalt.err (!%p1094_p1)
}
 0x37f   : > { %974 = dma.vmem_to_hbm [thread:$0]  (%p1302_p10), %s755_s23, 128, %s757_s12, %s741_s14  }
 0x380 PF: > { %p980_p2 = scmp.ge.s32.totalorder %s1180_s10, 2  ;;  %s768_s20 = sand.u32 1, %s1144_s24  }
 0x381   : > { %s769_s26 = scalar_lea.sflag [#allocation6], %s768_s20 }
 0x382   : > { %p977_p3 = pnand %p980_p2, %p1309_p12 }
 0x384   : > { %p978_p4 = pneg %p977_p3 }
 0x386   : > { %1139 = dma.done.wait (%p978_p4), %s769_s26, 128  }
 0x387   : > { %1141 = vsyncadd (%p978_p4), %s769_s26, 4294967168  ;;  %s20_s10 = sadd.s32 1, %s1180_s10   ;;  %s1483_s28 = sld [smem:[#allocation8_spill]] }
 0x388   : > { %p17_p5 = scmp.ge.s32.totalorder %s20_s10, 10   ;;  %s1484_s26 = sld [smem:[#allocation15_spill]] }
 0x389   : > { %s1485_s27 = sld [smem:[#allocation9_spill]]  ;;  %s1491_s24 = smov %s1148_s25 }
 0x38a   : > { %s1486_s21 = sld [smem:[#allocation14_spill]] }
 0x38b   : > { %s1487_s29 = sld [smem:[#allocation10_spill]] }
 0x38c   : > { %s1488_s30 = sld [smem:[#allocation11_spill]]  ;;  %19 = sbr.rel (!%p17_p5) target bundleno = 9 (0x9), region = 195 }
 0x38d   : > { %s1489_s8 = sld [smem:[#allocation12_spill]]  ;;  %s1492_s25 = smov %s1483_s28 }
 0x38e   : > { %s1490_s9 = sld [smem:[#allocation13_spill]] }
 0x390   : > { %s1493_s28 = smov %s1486_s21 }
 0x391   :  { %775 = vsyncpa [#allocation6], 1 }
 0x392   :  { %777 = vsyncpa [#allocation6 + $0x1], 1 }

</bundles_post_ra>
